<compile_context>
chip_gen: v7x
topology: tpu7x:2x2x1
jax: 0.10.0
libtpu: 0.0.40
codegen_flags: <defaults>
</compile_context>

<pallas_src>
import jax
import jax.numpy as jnp
from jax.experimental import pallas as pl
from jax.experimental.pallas import tpu as pltpu

_LANE = 128


def _round_up(x, m):
    return ((x + m - 1) // m) * m


# --------------------------------------------------------------------------- #
# Kernel
# --------------------------------------------------------------------------- #
def _action_proposal_kernel(task_ref, w1_ref, b1_ref, w2_ref, b2_ref, *out_refs):
    # task_ref: (TB, Dp)  w1_ref: (Dp, Hp)  b1_ref: (1, Hp)   [w* maybe bf16]
    # w2_ref:   (Hp, Ap)  b2_ref: (1, Ap)   outputs: (TB, Ap) f32
    x = task_ref[...]

    # Hidden layer: x @ W1 (MXU, f32 accumulate), bias + ReLU in f32.
    h = jnp.dot(x, w1_ref[...], preferred_element_type=jnp.float32)
    h = jnp.maximum(h + b1_ref[...], 0.0)

    # Output layer: cast activation to the weight dtype (bf16 fast path).
    logits = jnp.dot(h.astype(w2_ref.dtype), w2_ref[...],
                     preferred_element_type=jnp.float32)
    # Padded action lanes carry -1e30 baked into the bias padding, so they
    # cannot contribute to the softmax max/sum — no in-kernel mask needed.
    logits = logits + b2_ref[...]

    # Numerically-stable softmax over the (lane) action axis, f32 throughout.
    m = jnp.max(logits, axis=-1, keepdims=True)
    e = jnp.exp(logits - m)
    denom = jnp.sum(e, axis=-1, keepdims=True)
    probs = e * pl.reciprocal(denom, approx=True)   # EUP vrcp slot

    if len(out_refs) == 2:
        logits_ref, probs_ref = out_refs
        logits_ref[...] = logits.astype(logits_ref.dtype)
    else:
        (probs_ref,) = out_refs
    probs_ref[...] = probs.astype(probs_ref.dtype)


# --------------------------------------------------------------------------- #
# Parameter preparation (done ONCE; hoisted out of the per-call path)
# --------------------------------------------------------------------------- #
def prepare_action_proposal_params(w1, b1, w2, b2, *, use_bf16=True):
    """Pads / casts the head parameters once into lane-dense VMEM-ready slabs."""
    D, H = w1.shape
    A = w2.shape[1]
    b1 = jnp.asarray(b1).reshape(1, -1)
    b2 = jnp.asarray(b2).reshape(1, -1)

    x_dt = jnp.bfloat16 if use_bf16 else jnp.float32
    D_pad = _round_up(D, _LANE)
    H_pad = _round_up(H, _LANE)
    A_pad = _round_up(A, _LANE)

    w1_p = jnp.zeros((D_pad, H_pad), x_dt).at[:D, :H].set(w1.astype(x_dt))
    b1_p = jnp.zeros((1, H_pad), jnp.float32).at[:, :H].set(b1.astype(jnp.float32))
    w2_p = jnp.zeros((H_pad, A_pad), x_dt).at[:H, :A].set(w2.astype(x_dt))
    # Bake the padded-action mask into the bias: padded logit lanes = -1e30
    # (w2's padded columns are zero, so padded logits become exactly -1e30).
    b2_p = jnp.full((1, A_pad), -1e30, jnp.float32).at[:, :A].set(
        b2.astype(jnp.float32))

    return dict(w1=w1_p, b1=b1_p, w2=w2_p, b2=b2_p,
                D=D, H=H, A=A, D_pad=D_pad, H_pad=H_pad, A_pad=A_pad,
                use_bf16=use_bf16)


# --------------------------------------------------------------------------- #
# Generation-aware VMEM policy
# --------------------------------------------------------------------------- #
def _vmem_policy():
    try:
        vmem_phys = int(pltpu.get_tpu_info().vmem_capacity_bytes)
    except Exception:
        vmem_phys = 64 * 1024 * 1024          # unknown → assume v7x (smallest)
    if vmem_phys >= 100 * 1024 * 1024:        # v5e / v6e: 128 MiB physical
        return dict(budget=96 << 20, limit=100 << 20, tb_cap=1024,
                    force_two_steps=False)
    # v7x: 64 MiB physical, 32 MiB scoped default → stay under ~48 MiB and
    # make sure both TensorCores get a grid step.
    return dict(budget=28 << 20, limit=48 << 20, tb_cap=512,
                force_two_steps=True)


# --------------------------------------------------------------------------- #
# Forward wrapper
# --------------------------------------------------------------------------- #
def action_proposal_given_task(task, params, *, return_logits=False):
    """Runs the action-proposal head.

    Returns probs (B, A), or (logits, probs) if return_logits=True.
    """
    B, D = task.shape
    assert D == params["D"], "task dim mismatch with prepared params"
    D_pad, H_pad, A_pad = params["D_pad"], params["H_pad"], params["A_pad"]
    A = params["A"]
    use_bf16 = params["use_bf16"]

    x_dt = jnp.bfloat16 if use_bf16 else jnp.float32
    w_bytes = 2 if use_bf16 else 4
    sub = 16 if use_bf16 else 8               # bf16 packs 2 rows per sublane
    n_out = 2 if return_logits else 1

    pol = _vmem_policy()

    # --- pick batch tile TB against the generation-aware VMEM budget ---------
    weight_bytes = (D_pad * H_pad * w_bytes + H_pad * 4        # single-buffered
                    + H_pad * A_pad * w_bytes + A_pad * 4)
    per_row = (2 * D_pad * w_bytes            # task tile (double-buffered)
               + 2 * n_out * A_pad * 4        # output tiles (double-buffered)
               + H_pad * 4 + A_pad * 4)       # f32 intermediates
    tb_max = max(sub, (pol["budget"] - weight_bytes) // per_row)
    TB = min(pol["tb_cap"], _round_up(B, sub), (tb_max // sub) * sub)
    TB = max(sub, TB)
    if pol["force_two_steps"]:
        # v7x dual-TC: keep >=2 grid steps whenever the batch allows it.
        half = _round_up(max(-(-B // 2), sub), sub)
        TB = max(sub, min(TB, half))
    B_pad = _round_up(B, TB)

    # Per-call activation padding (task changes every call; weights do not).
    task_p = jnp.zeros((B_pad, D_pad), x_dt).at[:B, :D].set(task.astype(x_dt))

    cost = pl.CostEstimate(
        flops=2 * B_pad * (D_pad * H_pad + H_pad * A_pad),
        transcendentals=B_pad * A_pad,
        bytes_accessed=(B_pad * D_pad * w_bytes + weight_bytes
                        + n_out * B_pad * A_pad * 4),
    )

    out_shape = tuple(jax.ShapeDtypeStruct((B_pad, A_pad), jnp.float32)
                      for _ in range(n_out))
    out_specs = tuple(pl.BlockSpec((TB, A_pad), lambda i: (i, 0))
                      for _ in range(n_out))

    def _const_spec(shape, single_buffer):
        idx = lambda i: (0,) * len(shape)
        if single_buffer:
            # Constant index_map ⇒ no re-DMA after step 0; single buffer halves
            # the VMEM held by the resident weights.
            return pl.BlockSpec(shape, idx, pipeline_mode=pl.Buffered(1))
        return pl.BlockSpec(shape, idx)

    def _run(single_buffer):
        in_specs = [
            pl.BlockSpec((TB, D_pad), lambda i: (i, 0)),               # task
            _const_spec((D_pad, H_pad), single_buffer),                # w1
            _const_spec((1, H_pad), single_buffer),                    # b1
            _const_spec((H_pad, A_pad), single_buffer),                # w2
            _const_spec((1, A_pad), single_buffer),                    # b2
        ]
        return pl.pallas_call(
            _action_proposal_kernel,
            out_shape=out_shape,
            grid=(B_pad // TB,),
            in_specs=in_specs,
            out_specs=out_specs,
            compiler_params=pltpu.CompilerParams(
                dimension_semantics=("parallel",),
                vmem_limit_bytes=pol["limit"],
            ),
            cost_estimate=cost,
        )(task_p, params["w1"], params["b1"], params["w2"], params["b2"])

    single_buffer_ok = hasattr(pl, "Buffered")
    try:
        outs = _run(single_buffer_ok)
    except Exception:
        # Fallback: default double-buffered weight specs (always supported).
        outs = _run(False)

    if return_logits:
        logits_p, probs_p = outs
        return logits_p[:B, :A], probs_p[:B, :A]
    (probs_p,) = outs
    return probs_p[:B, :A]


# --------------------------------------------------------------------------- #
# Reference + smoke test
# --------------------------------------------------------------------------- #
def _reference(task, w1, b1, w2, b2):
    h = jnp.maximum(task @ w1 + b1, 0.0)
    logits = h @ w2 + b2
    return logits, jax.nn.softmax(logits, axis=-1)


if __name__ == "__main__":
    # Small shapes: batch=8 task embeddings of dim 32, hidden 64, 16 actions.
    B, D, H, A = 8, 32, 64, 16

    key = jax.random.PRNGKey(0)
    k_task, k_w1, k_b1, k_w2, k_b2 = jax.random.split(key, 5)

    task = jax.random.normal(k_task, (B, D), dtype=jnp.float32)
    # Deterministic synthetic parameters (no checkpoint loading).
    w1 = jax.random.normal(k_w1, (D, H), dtype=jnp.float32) * (1.0 / jnp.sqrt(D))
    b1 = jax.random.normal(k_b1, (1, H), dtype=jnp.float32) * 0.01
    w2 = jax.random.normal(k_w2, (H, A), dtype=jnp.float32) * (1.0 / jnp.sqrt(H))
    b2 = jax.random.normal(k_b2, (1, A), dtype=jnp.float32) * 0.01

    # Parameters are padded/cast exactly once, then reused across calls.
    params = prepare_action_proposal_params(w1, b1, w2, b2, use_bf16=True)

    # Full path (logits + probs) for verification.
    logits, probs = action_proposal_given_task(task, params, return_logits=True)
    jax.block_until_ready((logits, probs))

    # Reduced-writeback path (probs only — the module's ActionDistribution).
    probs_only = action_proposal_given_task(task, params, return_logits=False)
    jax.block_until_ready(probs_only)

    ref_logits, ref_probs = _reference(task, w1, b1, w2, b2)
    # Tolerances account for bf16 matmul operands + approximate reciprocal.
    assert logits.shape == (B, A) and probs.shape == (B, A)
    assert probs_only.shape == (B, A)
    assert jnp.allclose(logits, ref_logits, atol=5e-2, rtol=5e-2)
    assert jnp.allclose(probs, ref_probs, atol=1e-2, rtol=1e-2)
    assert jnp.allclose(probs_only, probs, atol=1e-6, rtol=1e-6)
    assert jnp.allclose(jnp.sum(probs, axis=-1), 1.0, atol=5e-3)

    print("KERNEL_OK")
</pallas_src>

<mosaic_0001>
module attributes {stable_mosaic.version = 11 : i64} {
  func.func @_action_proposal_kernel(%arg0: i32, %arg1: memref<16x128xbf16, #tpu.memory_space<vmem>>, %arg2: memref<128x128xbf16, #tpu.memory_space<vmem>>, %arg3: memref<1x128xf32, #tpu.memory_space<vmem>>, %arg4: memref<128x128xbf16, #tpu.memory_space<vmem>>, %arg5: memref<1x128xf32, #tpu.memory_space<vmem>>, %arg6: memref<16x128xf32, #tpu.memory_space<vmem>>, %arg7: memref<16x128xf32, #tpu.memory_space<vmem>>) attributes {dimension_semantics = [#tpu.dimension_semantics<parallel>], iteration_bounds = array<i64: 1>, scalar_prefetch = 0 : i64, scratch_operands = 0 : i64, tpu.core_type = #tpu.core_type<tc>, window_params = [{transform_indices = @transform_0, window_bounds = array<i64: 16, 128>}, {pipeline_mode = #tpu.pipeline_mode<synchronous>, transform_indices = @transform_1, window_bounds = array<i64: 128, 128>}, {pipeline_mode = #tpu.pipeline_mode<synchronous>, transform_indices = @transform_2, window_bounds = array<i64: 1, 128>}, {pipeline_mode = #tpu.pipeline_mode<synchronous>, transform_indices = @transform_3, window_bounds = array<i64: 128, 128>}, {pipeline_mode = #tpu.pipeline_mode<synchronous>, transform_indices = @transform_4, window_bounds = array<i64: 1, 128>}, {transform_indices = @transform_5, window_bounds = array<i64: 16, 128>}, {transform_indices = @transform_6, window_bounds = array<i64: 16, 128>}]} {
    %c0 = arith.constant 0 : index
    %c0_0 = arith.constant 0 : index
    %0 = vector.load %arg1[%c0, %c0_0] : memref<16x128xbf16, #tpu.memory_space<vmem>>, vector<16x128xbf16>
    %c0_1 = arith.constant 0 : index
    %c0_2 = arith.constant 0 : index
    %1 = vector.load %arg2[%c0_1, %c0_2] : memref<128x128xbf16, #tpu.memory_space<vmem>>, vector<128x128xbf16>
    %cst = arith.constant dense<0.000000e+00> : vector<16x128xf32>
    %2 = tpu.matmul %0, %1, %cst {dimension_numbers = #tpu.dot_dimension_numbers<[1], [0], [0], [1], [0, 0, 1, 1], [], []>} : vector<16x128xbf16>, vector<128x128xbf16>, vector<16x128xf32> -> vector<16x128xf32>
    %c0_3 = arith.constant 0 : index
    %c0_4 = arith.constant 0 : index
    %3 = vector.load %arg3[%c0_3, %c0_4] : memref<1x128xf32, #tpu.memory_space<vmem>>, vector<1x128xf32>
    %4 = vector.broadcast %3 : vector<1x128xf32> to vector<16x128xf32>
    %5 = arith.addf %2, %4 : vector<16x128xf32>
    %cst_5 = arith.constant 0.000000e+00 : f32
    %6 = vector.broadcast %cst_5 : f32 to vector<16x128xf32>
    %7 = arith.maximumf %5, %6 : vector<16x128xf32>
    %8 = arith.truncf %7 : vector<16x128xf32> to vector<16x128xbf16>
    %c0_6 = arith.constant 0 : index
    %c0_7 = arith.constant 0 : index
    %9 = vector.load %arg4[%c0_6, %c0_7] : memref<128x128xbf16, #tpu.memory_space<vmem>>, vector<128x128xbf16>
    %cst_8 = arith.constant dense<0.000000e+00> : vector<16x128xf32>
    %10 = tpu.matmul %8, %9, %cst_8 {dimension_numbers = #tpu.dot_dimension_numbers<[1], [0], [0], [1], [0, 0, 1, 1], [], []>} : vector<16x128xbf16>, vector<128x128xbf16>, vector<16x128xf32> -> vector<16x128xf32>
    %c0_9 = arith.constant 0 : index
    %c0_10 = arith.constant 0 : index
    %11 = vector.load %arg5[%c0_9, %c0_10] : memref<1x128xf32, #tpu.memory_space<vmem>>, vector<1x128xf32>
    %12 = vector.broadcast %11 : vector<1x128xf32> to vector<16x128xf32>
    %13 = arith.addf %10, %12 : vector<16x128xf32>
    %cst_11 = arith.constant dense<0xFF800000> : vector<16xf32>
    %14 = vector.multi_reduction <maximumf>, %13, %cst_11 [1] : vector<16x128xf32> to vector<16xf32>
    %15 = vector.shape_cast %14 : vector<16xf32> to vector<16x1xf32>
    %16 = vector.broadcast %15 : vector<16x1xf32> to vector<16x128xf32>
    %17 = arith.subf %13, %16 : vector<16x128xf32>
    %18 = math.exp %17 : vector<16x128xf32>
    %cst_12 = arith.constant dense<0.000000e+00> : vector<16xf32>
    %19 = vector.multi_reduction <add>, %18, %cst_12 [1] : vector<16x128xf32> to vector<16xf32>
    %20 = vector.shape_cast %19 : vector<16xf32> to vector<16x1xf32>
    %21 = tpu.reciprocal %20 {approx = true} : vector<16x1xf32> -> vector<16x1xf32>
    %22 = vector.broadcast %21 : vector<16x1xf32> to vector<16x128xf32>
    %23 = arith.mulf %18, %22 : vector<16x128xf32>
    %c0_13 = arith.constant 0 : index
    %c0_14 = arith.constant 0 : index
    %24 = vector.load %arg6[%c0_13, %c0_14] : memref<16x128xf32, #tpu.memory_space<vmem>>, vector<16x128xf32>
    tpu.vector_store %arg6[%c0_13, %c0_14], %13 {strides = array<i32>} : memref<16x128xf32, #tpu.memory_space<vmem>>, vector<16x128xf32>,
    %c0_15 = arith.constant 0 : index
    %c0_16 = arith.constant 0 : index
    %25 = vector.load %arg7[%c0_15, %c0_16] : memref<16x128xf32, #tpu.memory_space<vmem>>, vector<16x128xf32>
    tpu.vector_store %arg7[%c0_15, %c0_16], %23 {strides = array<i32>} : memref<16x128xf32, #tpu.memory_space<vmem>>, vector<16x128xf32>,
    return
  }
  func.func @transform_0(%arg0: i32) -> (i32, i32) {
    %c0_i32 = arith.constant 0 : i32
    %c0_i32_0 = arith.constant 0 : i32
    return %arg0, %c0_i32 : i32, i32
  }
  func.func @transform_1(%arg0: i32) -> (i32, i32) {
    %c0_i32 = arith.constant 0 : i32
    %c0_i32_0 = arith.constant 0 : i32
    %c0_i32_1 = arith.constant 0 : i32
    return %c0_i32, %c0_i32_0 : i32, i32
  }
  func.func @transform_2(%arg0: i32) -> (i32, i32) {
    %c0_i32 = arith.constant 0 : i32
    %c0_i32_0 = arith.constant 0 : i32
    %c0_i32_1 = arith.constant 0 : i32
    return %c0_i32, %c0_i32_0 : i32, i32
  }
  func.func @transform_3(%arg0: i32) -> (i32, i32) {
    %c0_i32 = arith.constant 0 : i32
    %c0_i32_0 = arith.constant 0 : i32
    %c0_i32_1 = arith.constant 0 : i32
    return %c0_i32, %c0_i32_0 : i32, i32
  }
  func.func @transform_4(%arg0: i32) -> (i32, i32) {
    %c0_i32 = arith.constant 0 : i32
    %c0_i32_0 = arith.constant 0 : i32
    %c0_i32_1 = arith.constant 0 : i32
    return %c0_i32, %c0_i32_0 : i32, i32
  }
  func.func @transform_5(%arg0: i32) -> (i32, i32) {
    %c0_i32 = arith.constant 0 : i32
    %c0_i32_0 = arith.constant 0 : i32
    return %arg0, %c0_i32 : i32, i32
  }
  func.func @transform_6(%arg0: i32) -> (i32, i32) {
    %c0_i32 = arith.constant 0 : i32
    %c0_i32_0 = arith.constant 0 : i32
    return %arg0, %c0_i32 : i32, i32
  }
}

module attributes {stable_mosaic.version = 11 : i64} {
  func.func @_action_proposal_kernel(%arg0: i32, %arg1: memref<16x128xbf16, #tpu.memory_space<vmem>>, %arg2: memref<128x128xbf16, #tpu.memory_space<vmem>>, %arg3: memref<1x128xf32, #tpu.memory_space<vmem>>, %arg4: memref<128x128xbf16, #tpu.memory_space<vmem>>, %arg5: memref<1x128xf32, #tpu.memory_space<vmem>>, %arg6: memref<16x128xf32, #tpu.memory_space<vmem>>, %arg7: memref<16x128xf32, #tpu.memory_space<vmem>>) attributes {dimension_semantics = [#tpu.dimension_semantics<parallel>], iteration_bounds = array<i64: 1>, scalar_prefetch = 0 : i64, scratch_operands = 0 : i64, tpu.core_type = #tpu.core_type<tc>, window_params = [{transform_indices = @transform_0, window_bounds = array<i64: 16, 128>}, {pipeline_mode = #tpu.pipeline_mode<synchronous>, transform_indices = @transform_1, window_bounds = array<i64: 128, 128>}, {pipeline_mode = #tpu.pipeline_mode<synchronous>, transform_indices = @transform_2, window_bounds = array<i64: 1, 128>}, {pipeline_mode = #tpu.pipeline_mode<synchronous>, transform_indices = @transform_3, window_bounds = array<i64: 128, 128>}, {pipeline_mode = #tpu.pipeline_mode<synchronous>, transform_indices = @transform_4, window_bounds = array<i64: 1, 128>}, {transform_indices = @transform_5, window_bounds = array<i64: 16, 128>}, {transform_indices = @transform_6, window_bounds = array<i64: 16, 128>}]} {
    %c0 = arith.constant 0 : index
    %c0_0 = arith.constant 0 : index
    %0 = vector.load %arg1[%c0, %c0_0] : memref<16x128xbf16, #tpu.memory_space<vmem>>, vector<16x128xbf16>
    %c0_1 = arith.constant 0 : index
    %c0_2 = arith.constant 0 : index
    %1 = vector.load %arg2[%c0_1, %c0_2] : memref<128x128xbf16, #tpu.memory_space<vmem>>, vector<128x128xbf16>
    %cst = arith.constant dense<0.000000e+00> : vector<16x128xf32>
    %2 = tpu.matmul %0, %1, %cst {dimension_numbers = #tpu.dot_dimension_numbers<[1], [0], [0], [1], [0, 0, 1, 1], [], []>} : vector<16x128xbf16>, vector<128x128xbf16>, vector<16x128xf32> -> vector<16x128xf32>
    %c0_3 = arith.constant 0 : index
    %c0_4 = arith.constant 0 : index
    %3 = vector.load %arg3[%c0_3, %c0_4] : memref<1x128xf32, #tpu.memory_space<vmem>>, vector<1x128xf32>
    %4 = vector.broadcast %3 : vector<1x128xf32> to vector<16x128xf32>
    %5 = arith.addf %2, %4 : vector<16x128xf32>
    %cst_5 = arith.constant 0.000000e+00 : f32
    %6 = vector.broadcast %cst_5 : f32 to vector<16x128xf32>
    %7 = arith.maximumf %5, %6 : vector<16x128xf32>
    %8 = arith.truncf %7 : vector<16x128xf32> to vector<16x128xbf16>
    %c0_6 = arith.constant 0 : index
    %c0_7 = arith.constant 0 : index
    %9 = vector.load %arg4[%c0_6, %c0_7] : memref<128x128xbf16, #tpu.memory_space<vmem>>, vector<128x128xbf16>
    %cst_8 = arith.constant dense<0.000000e+00> : vector<16x128xf32>
    %10 = tpu.matmul %8, %9, %cst_8 {dimension_numbers = #tpu.dot_dimension_numbers<[1], [0], [0], [1], [0, 0, 1, 1], [], []>} : vector<16x128xbf16>, vector<128x128xbf16>, vector<16x128xf32> -> vector<16x128xf32>
    %c0_9 = arith.constant 0 : index
    %c0_10 = arith.constant 0 : index
    %11 = vector.load %arg5[%c0_9, %c0_10] : memref<1x128xf32, #tpu.memory_space<vmem>>, vector<1x128xf32>
    %12 = vector.broadcast %11 : vector<1x128xf32> to vector<16x128xf32>
    %13 = arith.addf %10, %12 : vector<16x128xf32>
    %cst_11 = arith.constant dense<0xFF800000> : vector<16xf32>
    %14 = vector.multi_reduction <maximumf>, %13, %cst_11 [1] : vector<16x128xf32> to vector<16xf32>
    %15 = vector.shape_cast %14 : vector<16xf32> to vector<16x1xf32>
    %16 = vector.broadcast %15 : vector<16x1xf32> to vector<16x128xf32>
    %17 = arith.subf %13, %16 : vector<16x128xf32>
    %18 = math.exp %17 : vector<16x128xf32>
    %cst_12 = arith.constant dense<0.000000e+00> : vector<16xf32>
    %19 = vector.multi_reduction <add>, %18, %cst_12 [1] : vector<16x128xf32> to vector<16xf32>
    %20 = vector.shape_cast %19 : vector<16xf32> to vector<16x1xf32>
    %21 = tpu.reciprocal %20 {approx = true} : vector<16x1xf32> -> vector<16x1xf32>
    %22 = vector.broadcast %21 : vector<16x1xf32> to vector<16x128xf32>
    %23 = arith.mulf %18, %22 : vector<16x128xf32>
    %c0_13 = arith.constant 0 : index
    %c0_14 = arith.constant 0 : index
    %24 = vector.load %arg6[%c0_13, %c0_14] : memref<16x128xf32, #tpu.memory_space<vmem>>, vector<16x128xf32>
    tpu.vector_store %arg6[%c0_13, %c0_14], %13 {strides = array<i32>} : memref<16x128xf32, #tpu.memory_space<vmem>>, vector<16x128xf32>,
    %c0_15 = arith.constant 0 : index
    %c0_16 = arith.constant 0 : index
    %25 = vector.load %arg7[%c0_15, %c0_16] : memref<16x128xf32, #tpu.memory_space<vmem>>, vector<16x128xf32>
    tpu.vector_store %arg7[%c0_15, %c0_16], %23 {strides = array<i32>} : memref<16x128xf32, #tpu.memory_space<vmem>>, vector<16x128xf32>,
    return
  }
  func.func @transform_0(%arg0: i32) -> (i32, i32) {
    %c0_i32 = arith.constant 0 : i32
    %c0_i32_0 = arith.constant 0 : i32
    return %arg0, %c0_i32 : i32, i32
  }
  func.func @transform_1(%arg0: i32) -> (i32, i32) {
    %c0_i32 = arith.constant 0 : i32
    %c0_i32_0 = arith.constant 0 : i32
    %c0_i32_1 = arith.constant 0 : i32
    return %c0_i32, %c0_i32_0 : i32, i32
  }
  func.func @transform_2(%arg0: i32) -> (i32, i32) {
    %c0_i32 = arith.constant 0 : i32
    %c0_i32_0 = arith.constant 0 : i32
    %c0_i32_1 = arith.constant 0 : i32
    return %c0_i32, %c0_i32_0 : i32, i32
  }
  func.func @transform_3(%arg0: i32) -> (i32, i32) {
    %c0_i32 = arith.constant 0 : i32
    %c0_i32_0 = arith.constant 0 : i32
    %c0_i32_1 = arith.constant 0 : i32
    return %c0_i32, %c0_i32_0 : i32, i32
  }
  func.func @transform_4(%arg0: i32) -> (i32, i32) {
    %c0_i32 = arith.constant 0 : i32
    %c0_i32_0 = arith.constant 0 : i32
    %c0_i32_1 = arith.constant 0 : i32
    return %c0_i32, %c0_i32_0 : i32, i32
  }
  func.func @transform_5(%arg0: i32) -> (i32, i32) {
    %c0_i32 = arith.constant 0 : i32
    %c0_i32_0 = arith.constant 0 : i32
    return %arg0, %c0_i32 : i32, i32
  }
  func.func @transform_6(%arg0: i32) -> (i32, i32) {
    %c0_i32 = arith.constant 0 : i32
    %c0_i32_0 = arith.constant 0 : i32
    return %arg0, %c0_i32 : i32, i32
  }
}

</mosaic_0001>

<bundles_post_ra>
// kernel: tpu_custom_call.1
= control target key start
LH: loop header
LB: loop body
LE: loop exit
PB: predicated region body
PF: predicated region fallthrough
CT: control target
= control target key end

     0   :  { %12 = vsyncpa [#allocation3], 0  ;;  %s722_s0 = inlined_call_operand.hbm [shape: bf16[16,128], index: 0, kind: input, shape index: {}]   ;;  %s723_s1 = inlined_call_operand.hbm [shape: bf16[128,128], index: 1, kind: input, shape index: {}]   ;;  %s724_s2 = inlined_call_operand.vmem [shape: f32[1,128], index: 2, kind: input, shape index: {}]   ;;  %s725_s3 = inlined_call_operand.hbm [shape: bf16[128,128], index: 3, kind: input, shape index: {}]   ;;  %s726_s4 = inlined_call_operand.vmem [shape: f32[1,128], index: 4, kind: input, shape index: {}]   ;;  %s727_s5 = inlined_call_operand.hbm [shape: f32[16,128], index: 5, kind: output, shape index: {0}]   ;;  %s728_s6 = inlined_call_operand.hbm [shape: f32[16,128], index: 6, kind: output, shape index: {1}]  }
   0x1   :  { %13 = vsyncpa [#allocation6], 0 }
   0x2   :  { %14 = vsyncpa [#allocation4], 0 }
   0x3   :  { %15 = vsyncpa [#allocation10], 0  ;;  %s588_s21 = smov [#allocation5]   ;;  %s589_s23 = smov [#allocation2]  }
   0x4   :  { %s33_s22 = sshll.u32 %s588_s21, 4  ;;  %s21_s24 = sshll.u32 %s589_s23, 4  ;;  %s34_s22 = int_to_ptr.vmem [resolvable:$true] %s33_s22  ;;  %s634_s24 = int_to_ptr.vmem [resolvable:$true] %s21_s24 }
   0x5   :  { %s470_s27 = scalar_lea.hbm %s723_s1, 1024 }
   0x6   :  { %p471_p0 = scmp.ne.s32.totalorder %s723_s1, %s470_s27  ;;  %p474_p1 = scmp.lt.u32.totalorder %s470_s27, %s723_s1 }
   0x8   :  { %p476_p2 = pnand %p474_p1, %p471_p0 }
   0xa   :  { %479 = shalt.err (!%p476_p2)
}
   0xb   :  { %s480_s8 = scalar_lea.vmem %s34_s22, 1024  ;;  %p485_p4 = scmp.lt.s32.totalorder %s34_s22, %s34_s22 }
   0xc   :  { %p481_p3 = scmp.ne.s32.totalorder %s34_s22, %s480_s8  ;;  %p486_p5 = scmp.lt.s32.totalorder %s480_s8, %s480_s8 }
   0xe   :  { %p487_p6 = por %p486_p5, %p485_p4 }
  0x10   :  { %p488_p7 = pnand %p487_p6, %p481_p3 }
  0x12   :  { %491 = shalt.err (!%p488_p7)
}
  0x13   :  { %s590_s9 = smov 64   ;;  %s591_s10 = smov 4  }
  0x14   :  { %39 = dma.hbm_to_vmem [thread:$0]  %s723_s1, 1024, %s34_s22, [#allocation6], %s590_s9, %s590_s9, %s591_s10  }
  0x15   :  { %s492_s15 = scalar_lea.hbm %s722_s0, 128 }
  0x16   :  { %p493_p8 = scmp.ne.s32.totalorder %s722_s0, %s492_s15  ;;  %p496_p9 = scmp.lt.u32.totalorder %s492_s15, %s722_s0 }
  0x18   :  { %p498_p10 = pnand %p496_p9, %p493_p8 }
  0x1a   :  { %501 = shalt.err (!%p498_p10)
}
  0x1b   :  { %s502_s20 = scalar_lea.vmem %s634_s24, 128  ;;  %p507_p12 = scmp.lt.s32.totalorder %s634_s24, %s634_s24 }
  0x1c   :  { %p503_p11 = scmp.ne.s32.totalorder %s634_s24, %s502_s20  ;;  %p508_p13 = scmp.lt.s32.totalorder %s502_s20, %s502_s20 }
  0x1e   :  { %p509_p0 = por %p508_p13, %p507_p12 }
  0x20   :  { %p510_p1 = pnand %p509_p0, %p503_p11 }
  0x22   :  { %513 = shalt.err (!%p510_p1)
}
  0x23   :  { %27 = dma.hbm_to_vmem [thread:$0]  %s722_s0, 128, %s634_s24, [#allocation3], %s590_s9, %s590_s9, %s591_s10  }
  0x24   :  { %s592_s22 = smov [#allocation7]   ;;  %s514_s27 = scalar_lea.hbm %s725_s3, 1024 }
  0x25   :  { %s47_s23 = sshll.u32 %s592_s22, 4  ;;  %p515_p2 = scmp.ne.s32.totalorder %s725_s3, %s514_s27  ;;  %s48_s23 = int_to_ptr.vmem [resolvable:$true] %s47_s23 }
  0x26   :  { %p518_p3 = scmp.lt.u32.totalorder %s514_s27, %s725_s3 }
  0x28   :  { %p520_p4 = pnand %p518_p3, %p515_p2 }
  0x2a   :  { %523 = shalt.err (!%p520_p4)
}
  0x2b   :  { %s524_s8 = scalar_lea.vmem %s48_s23, 1024  ;;  %p529_p6 = scmp.lt.s32.totalorder %s48_s23, %s48_s23 }
  0x2c   :  { %p525_p5 = scmp.ne.s32.totalorder %s48_s23, %s524_s8  ;;  %p530_p7 = scmp.lt.s32.totalorder %s524_s8, %s524_s8 }
  0x2e   :  { %p531_p8 = por %p530_p7, %p529_p6 }
  0x30   :  { %p532_p9 = pnand %p531_p8, %p525_p5 }
  0x32   :  { %535 = shalt.err (!%p532_p9)
}
  0x33   :  { %53 = dma.hbm_to_vmem [thread:$0]  %s725_s3, 1024, %s48_s23, [#allocation6], %s590_s9, %s590_s9, %s591_s10  }
  0x34   :  { %580 = dma.done.wait [#allocation3], 128  }
  0x35   :  { %581 = vsyncadd [#allocation3], 4294967168 }
  0x36   :  { %582 = dma.done.wait [#allocation6], 2048  }
  0x37   :  { %583 = vsyncadd [#allocation6], 4294965248  ;;  %v593_v0 = vmov 0.0   ;;  %vm594_vm0 = vmmov 0   ;;  %v445_v1 = vld [vmem:[#allocation5] sm:$0xff]   ;;  %v446_v2 = vld [vmem:[#allocation5 + $0x8] sm:$0xff]  }
  0x38   :  { %394 = vmatprep.subr.bf16.mxu0 %v593_v0  ;;  %410 = vmatprep.mubr.msk.bf16.mxu0 %vm594_vm0, %v593_v0  ;;  %v447_v3 = vld [vmem:[#allocation5 + $0x10] sm:$0xff]   ;;  %v454_v4 = vld [vmem:[#allocation7] sm:$0xff]   ;;  %v448_v5 = vld [vmem:[#allocation5 + $0x18] sm:$0xff]  }
  0x39   :  { %414 = vmatprep.subr.bf16.mxu1 %v593_v0  ;;  %430 = vmatprep.mubr.msk.bf16.mxu1 %vm594_vm0, %v593_v0  ;;  %v455_v6 = vld [vmem:[#allocation7 + $0x8] sm:$0xff]   ;;  %v449_v7 = vld [vmem:[#allocation5 + $0x20] sm:$0xff]   ;;  %v456_v8 = vld [vmem:[#allocation7 + $0x10] sm:$0xff]  }
  0x3a   :  { %395 = vmatpush3.bf16.msra.mxu0 %v445_v1  ;;  %415 = vmatpush3.bf16.msra.mxu1 %v454_v4  ;;  %v450_v9 = vld [vmem:[#allocation5 + $0x28] sm:$0xff]   ;;  %v457_v10 = vld [vmem:[#allocation7 + $0x18] sm:$0xff]   ;;  %v451_v11 = vld [vmem:[#allocation5 + $0x30] sm:$0xff]  }
  0x3b   :  { %396 = vmatprep.subr.bf16.mxu0 %v593_v0  ;;  %416 = vmatprep.subr.bf16.mxu1 %v593_v0  ;;  %v458_v12 = vld [vmem:[#allocation7 + $0x20] sm:$0xff]   ;;  %v452_v13 = vld [vmem:[#allocation5 + $0x38] sm:$0xff]   ;;  %v459_v14 = vld [vmem:[#allocation7 + $0x28] sm:$0xff]  }
  0x3c   :  { %v453_v15 = vld [vmem:[#allocation2] sm:$0xff]   ;;  %v460_v16 = vld [vmem:[#allocation7 + $0x30] sm:$0xff]  }
  0x3d   :  { %v461_v17 = vld [vmem:[#allocation7 + $0x38] sm:$0xff]  }
  0x3e   :  { %397 = vmatpush3.bf16.msra.mxu0 %v446_v2  ;;  %417 = vmatpush3.bf16.msra.mxu1 %v455_v6  ;;  %v357_v18 = vld [vmem:[%s724_s2] ss:$0 sm:$0xff]  ;;  %s595_s2 = smov [#allocation8]  }
  0x3f   :  { %398 = vmatprep.subr.bf16.mxu0 %v593_v0  ;;  %418 = vmatprep.subr.bf16.mxu1 %v593_v0  ;;  %v367_v28 = vld [vmem:[%s726_s4] ss:$0 sm:$0xff]  ;;  %s328_s4 = sshll.u32 %s595_s2, 4  ;;  %s329_s4 = int_to_ptr.vmem [resolvable:$true] %s328_s4 }
  0x40   :  { %s536_s12 = scalar_lea.vmem %s329_s4, 256  ;;  %p541_p11 = scmp.lt.s32.totalorder %s329_s4, %s329_s4 }
  0x41   :  { %p537_p10 = scmp.ne.s32.totalorder %s329_s4, %s536_s12  ;;  %p542_p12 = scmp.lt.s32.totalorder %s536_s12, %s536_s12 }
  0x42   :  { %399 = vmatpush3.bf16.msra.mxu0 %v447_v3  ;;  %419 = vmatpush3.bf16.msra.mxu1 %v456_v8 }
  0x43   :  { %400 = vmatprep.subr.bf16.mxu0 %v593_v0  ;;  %420 = vmatprep.subr.bf16.mxu1 %v593_v0  ;;  %p543_p13 = por %p542_p12, %p541_p11 }
  0x45   :  { %p544_p0 = pnand %p543_p13, %p537_p10 }
  0x46   :  { %401 = vmatpush3.bf16.msra.mxu0 %v448_v5  ;;  %421 = vmatpush3.bf16.msra.mxu1 %v457_v10 }
  0x47   :  { %402 = vmatprep.subr.bf16.mxu0 %v593_v0  ;;  %422 = vmatprep.subr.bf16.mxu1 %v593_v0 }
  0x4a   :  { %403 = vmatpush3.bf16.msra.mxu0 %v449_v7  ;;  %423 = vmatpush3.bf16.msra.mxu1 %v458_v12 }
  0x4b   :  { %404 = vmatprep.subr.bf16.mxu0 %v593_v0  ;;  %424 = vmatprep.subr.bf16.mxu1 %v593_v0 }
  0x4e   :  { %405 = vmatpush3.bf16.msra.mxu0 %v450_v9  ;;  %425 = vmatpush3.bf16.msra.mxu1 %v459_v14 }
  0x4f   :  { %406 = vmatprep.subr.bf16.mxu0 %v593_v0  ;;  %426 = vmatprep.subr.bf16.mxu1 %v593_v0 }
  0x52   :  { %407 = vmatpush3.bf16.msra.mxu0 %v451_v11  ;;  %427 = vmatpush3.bf16.msra.mxu1 %v460_v16 }
  0x53   :  { %408 = vmatprep.subr.bf16.mxu0 %v593_v0  ;;  %428 = vmatprep.subr.bf16.mxu1 %v593_v0 }
  0x56   :  { %409 = vmatpush3.bf16.msra.mxu0 %v452_v13  ;;  %429 = vmatpush3.bf16.msra.mxu1 %v461_v17 }
  0x59   :  { %411 = vmatmul.mubr.bf16.vlgmr.msra.gmra.mrb[0].mxu0 %v453_v15 }
 0x12c   :  { %v179_v19 = vpop.f32.mrb[0].mxu0 }
 0x12d   :  { %v180_v20 = vadd.f32 %v357_v18, %v179_v19  ;;  %v412_v21 = vpop.f32.mrb[1].mxu0 }
 0x12e   :  { %v182_v22 = vpop.f32.mrb[2].mxu0 }
 0x12f   :  { %v183_v23 = vadd.f32 %v357_v18, %v182_v22  ;;  %v413_v24 = vpop.f32.mrb[3].mxu0  ;;  %v186_v25 = vmax.f32 %v180_v20, 0.0 }
 0x131   :  { %v187_v26 = vmax.f32 %v183_v23, 0.0 }
 0x133   :  { %v188_v27 = vpack.c.bf16 %v187_v26, %v186_v25 }
 0x135   :  { %431 = vmatmul.mubr.bf16.vlgmr.msra.gmra.mrb[0].mxu1 %v188_v27 }
 0x208   :  { %v294_v29 = vpop.f32.mrb[0].mxu1 }
 0x209   :  { %v295_v30 = vadd.f32 %v367_v28, %v294_v29  ;;  %v432_v31 = vpop.f32.mrb[1].mxu1 }
 0x20a   :  { %v297_v32 = vpop.f32.mrb[2].mxu1 }
 0x20b   :  { %319 = vst [vmem:[#allocation8] sm:$0xff] %v295_v30  ;;  %v298_v33 = vadd.f32 %v367_v28, %v297_v32  ;;  %301 = vmax.xlane.f32.xlu0 %v295_v30  ;;  %v433_v34 = vpop.f32.mrb[3].mxu1 }
 0x20d   :  { %320 = vst [vmem:[#allocation8 + $0x8] sm:$0xff] %v298_v33 }
 0x20f   :  { %303 = vmax.xlane.f32.xlu0 %v298_v33 }
 0x298   :  { %v302_v35 = vpop.xlane.xlu0 %301 }
 0x299   :  { %v305_v36 = vsub.f32 %v295_v30, %v302_v35 }
 0x29b   :  { %v307_v37 = vmul.f32 1.442695, %v305_v36 }
 0x29c   :  { %v304_v38 = vpop.xlane.xlu0 %303 }
 0x29d   :  { %462 = vpow2.f32 %v307_v37  ;;  %v306_v39 = vsub.f32 %v298_v33, %v304_v38 }
 0x29f   :  { %v309_v40 = vmul.f32 1.442695, %v306_v39 }
 0x2a1   :  { %464 = vpow2.f32 %v309_v40 }
 0x2a7   :  { %v463_v41 = vpop.eup %462 }
 0x2a8   :  { %311 = vadd.xlane.f32.xlu1 %v463_v41 }
 0x2ab   :  { %v465_v42 = vpop.eup %464 }
 0x2ac   :  { %313 = vadd.xlane.f32.xlu1 %v465_v42 }
 0x2ad   :  { %547 = shalt.err (!%p544_p0)
}
 0x2ae   :  { %s548_s15 = scalar_lea.hbm %s727_s5, 256 }
 0x2af   :  { %p549_p1 = scmp.ne.s32.totalorder %s727_s5, %s548_s15  ;;  %p552_p2 = scmp.lt.u32.totalorder %s548_s15, %s727_s5 }
 0x2b1   :  { %p554_p3 = pnand %p552_p2, %p549_p1 }
 0x2b3   :  { %557 = shalt.err (!%p554_p3)
}
 0x2b4   :  { %s596_s20 = smov 128   ;;  %s597_s1 = smov 8  }
 0x2b5   :  { %334 = dma.vmem_to_hbm [thread:$0]  %s329_s4, 256, %s727_s5, [#allocation4], %s596_s20, %s596_s20, %s597_s1  }
 0x2b6   :  { %s598_s23 = smov [#allocation9]  }
 0x2b7   :  { %s340_s25 = sshll.u32 %s598_s23, 4  ;;  %s341_s25 = int_to_ptr.vmem [resolvable:$true] %s340_s25 }
 0x2b8   :  { %s558_s26 = scalar_lea.vmem %s341_s25, 256  ;;  %p563_p5 = scmp.lt.s32.totalorder %s341_s25, %s341_s25 }
 0x2b9   :  { %p559_p4 = scmp.ne.s32.totalorder %s341_s25, %s558_s26  ;;  %p564_p6 = scmp.lt.s32.totalorder %s558_s26, %s558_s26 }
 0x2bb   :  { %p565_p7 = por %p564_p6, %p563_p5 }
 0x2bd   :  { %p566_p8 = pnand %p565_p7, %p559_p4 }
 0x335   :  { %v312_v43 = vpop.xlane.xlu1 %311 }
 0x336   :  { %466 = vrcp.f32 %v312_v43 }
 0x339   :  { %v314_v44 = vpop.xlane.xlu1 %313 }
 0x33a   :  { %468 = vrcp.f32 %v314_v44 }
 0x340   :  { %v467_v45 = vpop.eup %466 }
 0x341   :  { %v317_v46 = vmul.f32 %v467_v45, %v463_v41 }
 0x343   :  { %321 = vst [vmem:[#allocation9] sm:$0xff] %v317_v46 }
 0x344   :  { %v469_v47 = vpop.eup %468 }
 0x345   :  { %v318_v48 = vmul.f32 %v469_v47, %v465_v42 }
 0x347   :  { %322 = vst [vmem:[#allocation9 + $0x8] sm:$0xff] %v318_v48 }
 0x348   :  { %569 = shalt.err (!%p566_p8)
}
 0x349   :  { %s570_s28 = scalar_lea.hbm %s728_s6, 256 }
 0x34a   :  { %p571_p9 = scmp.ne.s32.totalorder %s728_s6, %s570_s28  ;;  %p574_p10 = scmp.lt.u32.totalorder %s570_s28, %s728_s6 }
 0x34c   :  { %p576_p11 = pnand %p574_p10, %p571_p9 }
 0x34e   :  { %579 = shalt.err (!%p576_p11)
}
 0x34f   :  { %346 = dma.vmem_to_hbm [thread:$0]  %s341_s25, 256, %s728_s6, [#allocation10], %s596_s20, %s596_s20, %s597_s1  }
 0x350   :  { %584 = dma.done.wait [#allocation4], 256  }
 0x351   :  { %585 = vsyncadd [#allocation4], 4294967040 }
 0x352   :  { %586 = dma.done.wait [#allocation10], 256  }
 0x353   :  { %587 = vsyncadd [#allocation10], 4294967040 }
 0x354   :  { %353 = vsyncpa [#allocation3], 1 }
 0x355   :  { %354 = vsyncpa [#allocation6], 1 }
 0x356   :  { %355 = vsyncpa [#allocation4], 1 }
 0x357   :  { %356 = vsyncpa [#allocation10], 1 }

// kernel: tpu_custom_call.1
= control target key start
LH: loop header
LB: loop body
LE: loop exit
PB: predicated region body
PF: predicated region fallthrough
CT: control target
= control target key end

     0   :  { %12 = vsyncpa [#allocation3], 0  ;;  %s722_s0 = inlined_call_operand.hbm [shape: bf16[16,128], index: 0, kind: input, shape index: {}]   ;;  %s723_s1 = inlined_call_operand.hbm [shape: bf16[128,128], index: 1, kind: input, shape index: {}]   ;;  %s724_s2 = inlined_call_operand.vmem [shape: f32[1,128], index: 2, kind: input, shape index: {}]   ;;  %s725_s3 = inlined_call_operand.hbm [shape: bf16[128,128], index: 3, kind: input, shape index: {}]   ;;  %s726_s4 = inlined_call_operand.vmem [shape: f32[1,128], index: 4, kind: input, shape index: {}]   ;;  %s727_s5 = inlined_call_operand.hbm [shape: f32[16,128], index: 5, kind: output, shape index: {0}]   ;;  %s728_s6 = inlined_call_operand.hbm [shape: f32[16,128], index: 6, kind: output, shape index: {1}]  }
   0x1   :  { %13 = vsyncpa [#allocation6], 0 }
   0x2   :  { %14 = vsyncpa [#allocation4], 0 }
   0x3   :  { %15 = vsyncpa [#allocation10], 0  ;;  %s588_s21 = smov [#allocation5]   ;;  %s589_s23 = smov [#allocation2]  }
   0x4   :  { %s33_s22 = sshll.u32 %s588_s21, 4  ;;  %s21_s24 = sshll.u32 %s589_s23, 4  ;;  %s34_s22 = int_to_ptr.vmem [resolvable:$true] %s33_s22  ;;  %s634_s24 = int_to_ptr.vmem [resolvable:$true] %s21_s24 }
   0x5   :  { %s470_s27 = scalar_lea.hbm %s723_s1, 1024 }
   0x6   :  { %p471_p0 = scmp.ne.s32.totalorder %s723_s1, %s470_s27  ;;  %p474_p1 = scmp.lt.u32.totalorder %s470_s27, %s723_s1 }
   0x8   :  { %p476_p2 = pnand %p474_p1, %p471_p0 }
   0xa   :  { %479 = shalt.err (!%p476_p2)
}
   0xb   :  { %s480_s8 = scalar_lea.vmem %s34_s22, 1024  ;;  %p485_p4 = scmp.lt.s32.totalorder %s34_s22, %s34_s22 }
   0xc   :  { %p481_p3 = scmp.ne.s32.totalorder %s34_s22, %s480_s8  ;;  %p486_p5 = scmp.lt.s32.totalorder %s480_s8, %s480_s8 }
   0xe   :  { %p487_p6 = por %p486_p5, %p485_p4 }
  0x10   :  { %p488_p7 = pnand %p487_p6, %p481_p3 }
  0x12   :  { %491 = shalt.err (!%p488_p7)
}
  0x13   :  { %s590_s9 = smov 64   ;;  %s591_s10 = smov 4  }
  0x14   :  { %39 = dma.hbm_to_vmem [thread:$0]  %s723_s1, 1024, %s34_s22, [#allocation6], %s590_s9, %s590_s9, %s591_s10  }
  0x15   :  { %s492_s15 = scalar_lea.hbm %s722_s0, 128 }
  0x16   :  { %p493_p8 = scmp.ne.s32.totalorder %s722_s0, %s492_s15  ;;  %p496_p9 = scmp.lt.u32.totalorder %s492_s15, %s722_s0 }
  0x18   :  { %p498_p10 = pnand %p496_p9, %p493_p8 }
  0x1a   :  { %501 = shalt.err (!%p498_p10)
}
  0x1b   :  { %s502_s20 = scalar_lea.vmem %s634_s24, 128  ;;  %p507_p12 = scmp.lt.s32.totalorder %s634_s24, %s634_s24 }
  0x1c   :  { %p503_p11 = scmp.ne.s32.totalorder %s634_s24, %s502_s20  ;;  %p508_p13 = scmp.lt.s32.totalorder %s502_s20, %s502_s20 }
  0x1e   :  { %p509_p0 = por %p508_p13, %p507_p12 }
  0x20   :  { %p510_p1 = pnand %p509_p0, %p503_p11 }
  0x22   :  { %513 = shalt.err (!%p510_p1)
}
  0x23   :  { %27 = dma.hbm_to_vmem [thread:$0]  %s722_s0, 128, %s634_s24, [#allocation3], %s590_s9, %s590_s9, %s591_s10  }
  0x24   :  { %s592_s22 = smov [#allocation7]   ;;  %s514_s27 = scalar_lea.hbm %s725_s3, 1024 }
  0x25   :  { %s47_s23 = sshll.u32 %s592_s22, 4  ;;  %p515_p2 = scmp.ne.s32.totalorder %s725_s3, %s514_s27  ;;  %s48_s23 = int_to_ptr.vmem [resolvable:$true] %s47_s23 }
  0x26   :  { %p518_p3 = scmp.lt.u32.totalorder %s514_s27, %s725_s3 }
  0x28   :  { %p520_p4 = pnand %p518_p3, %p515_p2 }
  0x2a   :  { %523 = shalt.err (!%p520_p4)
}
  0x2b   :  { %s524_s8 = scalar_lea.vmem %s48_s23, 1024  ;;  %p529_p6 = scmp.lt.s32.totalorder %s48_s23, %s48_s23 }
  0x2c   :  { %p525_p5 = scmp.ne.s32.totalorder %s48_s23, %s524_s8  ;;  %p530_p7 = scmp.lt.s32.totalorder %s524_s8, %s524_s8 }
  0x2e   :  { %p531_p8 = por %p530_p7, %p529_p6 }
  0x30   :  { %p532_p9 = pnand %p531_p8, %p525_p5 }
  0x32   :  { %535 = shalt.err (!%p532_p9)
}
  0x33   :  { %53 = dma.hbm_to_vmem [thread:$0]  %s725_s3, 1024, %s48_s23, [#allocation6], %s590_s9, %s590_s9, %s591_s10  }
  0x34   :  { %580 = dma.done.wait [#allocation3], 128  }
  0x35   :  { %581 = vsyncadd [#allocation3], 4294967168 }
  0x36   :  { %582 = dma.done.wait [#allocation6], 2048  }
  0x37   :  { %583 = vsyncadd [#allocation6], 4294965248  ;;  %v593_v0 = vmov 0.0   ;;  %vm594_vm0 = vmmov 0   ;;  %v445_v1 = vld [vmem:[#allocation5] sm:$0xff]   ;;  %v446_v2 = vld [vmem:[#allocation5 + $0x8] sm:$0xff]  }
  0x38   :  { %394 = vmatprep.subr.bf16.mxu0 %v593_v0  ;;  %410 = vmatprep.mubr.msk.bf16.mxu0 %vm594_vm0, %v593_v0  ;;  %v447_v3 = vld [vmem:[#allocation5 + $0x10] sm:$0xff]   ;;  %v454_v4 = vld [vmem:[#allocation7] sm:$0xff]   ;;  %v448_v5 = vld [vmem:[#allocation5 + $0x18] sm:$0xff]  }
  0x39   :  { %414 = vmatprep.subr.bf16.mxu1 %v593_v0  ;;  %430 = vmatprep.mubr.msk.bf16.mxu1 %vm594_vm0, %v593_v0  ;;  %v455_v6 = vld [vmem:[#allocation7 + $0x8] sm:$0xff]   ;;  %v449_v7 = vld [vmem:[#allocation5 + $0x20] sm:$0xff]   ;;  %v456_v8 = vld [vmem:[#allocation7 + $0x10] sm:$0xff]  }
  0x3a   :  { %395 = vmatpush3.bf16.msra.mxu0 %v445_v1  ;;  %415 = vmatpush3.bf16.msra.mxu1 %v454_v4  ;;  %v450_v9 = vld [vmem:[#allocation5 + $0x28] sm:$0xff]   ;;  %v457_v10 = vld [vmem:[#allocation7 + $0x18] sm:$0xff]   ;;  %v451_v11 = vld [vmem:[#allocation5 + $0x30] sm:$0xff]  }
  0x3b   :  { %396 = vmatprep.subr.bf16.mxu0 %v593_v0  ;;  %416 = vmatprep.subr.bf16.mxu1 %v593_v0  ;;  %v458_v12 = vld [vmem:[#allocation7 + $0x20] sm:$0xff]   ;;  %v452_v13 = vld [vmem:[#allocation5 + $0x38] sm:$0xff]   ;;  %v459_v14 = vld [vmem:[#allocation7 + $0x28] sm:$0xff]  }
  0x3c   :  { %v453_v15 = vld [vmem:[#allocation2] sm:$0xff]   ;;  %v460_v16 = vld [vmem:[#allocation7 + $0x30] sm:$0xff]  }
  0x3d   :  { %v461_v17 = vld [vmem:[#allocation7 + $0x38] sm:$0xff]  }
  0x3e   :  { %397 = vmatpush3.bf16.msra.mxu0 %v446_v2  ;;  %417 = vmatpush3.bf16.msra.mxu1 %v455_v6  ;;  %v357_v18 = vld [vmem:[%s724_s2] ss:$0 sm:$0xff]  ;;  %s595_s2 = smov [#allocation8]  }
  0x3f   :  { %398 = vmatprep.subr.bf16.mxu0 %v593_v0  ;;  %418 = vmatprep.subr.bf16.mxu1 %v593_v0  ;;  %v367_v28 = vld [vmem:[%s726_s4] ss:$0 sm:$0xff]  ;;  %s328_s4 = sshll.u32 %s595_s2, 4  ;;  %s329_s4 = int_to_ptr.vmem [resolvable:$true] %s328_s4 }
  0x40   :  { %s536_s12 = scalar_lea.vmem %s329_s4, 256  ;;  %p541_p11 = scmp.lt.s32.totalorder %s329_s4, %s329_s4 }
  0x41   :  { %p537_p10 = scmp.ne.s32.totalorder %s329_s4, %s536_s12  ;;  %p542_p12 = scmp.lt.s32.totalorder %s536_s12, %s536_s12 }
  0x42   :  { %399 = vmatpush3.bf16.msra.mxu0 %v447_v3  ;;  %419 = vmatpush3.bf16.msra.mxu1 %v456_v8 }
  0x43   :  { %400 = vmatprep.subr.bf16.mxu0 %v593_v0  ;;  %420 = vmatprep.subr.bf16.mxu1 %v593_v0  ;;  %p543_p13 = por %p542_p12, %p541_p11 }
  0x45   :  { %p544_p0 = pnand %p543_p13, %p537_p10 }
  0x46   :  { %401 = vmatpush3.bf16.msra.mxu0 %v448_v5  ;;  %421 = vmatpush3.bf16.msra.mxu1 %v457_v10 }
  0x47   :  { %402 = vmatprep.subr.bf16.mxu0 %v593_v0  ;;  %422 = vmatprep.subr.bf16.mxu1 %v593_v0 }
  0x4a   :  { %403 = vmatpush3.bf16.msra.mxu0 %v449_v7  ;;  %423 = vmatpush3.bf16.msra.mxu1 %v458_v12 }
  0x4b   :  { %404 = vmatprep.subr.bf16.mxu0 %v593_v0  ;;  %424 = vmatprep.subr.bf16.mxu1 %v593_v0 }
  0x4e   :  { %405 = vmatpush3.bf16.msra.mxu0 %v450_v9  ;;  %425 = vmatpush3.bf16.msra.mxu1 %v459_v14 }
  0x4f   :  { %406 = vmatprep.subr.bf16.mxu0 %v593_v0  ;;  %426 = vmatprep.subr.bf16.mxu1 %v593_v0 }
  0x52   :  { %407 = vmatpush3.bf16.msra.mxu0 %v451_v11  ;;  %427 = vmatpush3.bf16.msra.mxu1 %v460_v16 }
  0x53   :  { %408 = vmatprep.subr.bf16.mxu0 %v593_v0  ;;  %428 = vmatprep.subr.bf16.mxu1 %v593_v0 }
  0x56   :  { %409 = vmatpush3.bf16.msra.mxu0 %v452_v13  ;;  %429 = vmatpush3.bf16.msra.mxu1 %v461_v17 }
  0x59   :  { %411 = vmatmul.mubr.bf16.vlgmr.msra.gmra.mrb[0].mxu0 %v453_v15 }
 0x12c   :  { %v179_v19 = vpop.f32.mrb[0].mxu0 }
 0x12d   :  { %v180_v20 = vadd.f32 %v357_v18, %v179_v19  ;;  %v412_v21 = vpop.f32.mrb[1].mxu0 }
 0x12e   :  { %v182_v22 = vpop.f32.mrb[2].mxu0 }
 0x12f   :  { %v183_v23 = vadd.f32 %v357_v18, %v182_v22  ;;  %v413_v24 = vpop.f32.mrb[3].mxu0  ;;  %v186_v25 = vmax.f32 %v180_v20, 0.0 }
 0x131   :  { %v187_v26 = vmax.f32 %v183_v23, 0.0 }
 0x133   :  { %v188_v27 = vpack.c.bf16 %v187_v26, %v186_v25 }
 0x135   :  { %431 = vmatmul.mubr.bf16.vlgmr.msra.gmra.mrb[0].mxu1 %v188_v27 }
 0x208   :  { %v294_v29 = vpop.f32.mrb[0].mxu1 }
 0x209   :  { %v295_v30 = vadd.f32 %v367_v28, %v294_v29  ;;  %v432_v31 = vpop.f32.mrb[1].mxu1 }
 0x20a   :  { %v297_v32 = vpop.f32.mrb[2].mxu1 }
 0x20b   :  { %319 = vst [vmem:[#allocation8] sm:$0xff] %v295_v30  ;;  %v298_v33 = vadd.f32 %v367_v28, %v297_v32  ;;  %301 = vmax.xlane.f32.xlu0 %v295_v30  ;;  %v433_v34 = vpop.f32.mrb[3].mxu1 }
 0x20d   :  { %320 = vst [vmem:[#allocation8 + $0x8] sm:$0xff] %v298_v33 }
 0x20f   :  { %303 = vmax.xlane.f32.xlu0 %v298_v33 }
 0x298   :  { %v302_v35 = vpop.xlane.xlu0 %301 }
 0x299   :  { %v305_v36 = vsub.f32 %v295_v30, %v302_v35 }
 0x29b   :  { %v307_v37 = vmul.f32 1.442695, %v305_v36 }
 0x29c   :  { %v304_v38 = vpop.xlane.xlu0 %303 }
 0x29d   :  { %462 = vpow2.f32 %v307_v37  ;;  %v306_v39 = vsub.f32 %v298_v33, %v304_v38 }
 0x29f   :  { %v309_v40 = vmul.f32 1.442695, %v306_v39 }
 0x2a1   :  { %464 = vpow2.f32 %v309_v40 }
 0x2a7   :  { %v463_v41 = vpop.eup %462 }
 0x2a8   :  { %311 = vadd.xlane.f32.xlu1 %v463_v41 }
 0x2ab   :  { %v465_v42 = vpop.eup %464 }
 0x2ac   :  { %313 = vadd.xlane.f32.xlu1 %v465_v42 }
 0x2ad   :  { %547 = shalt.err (!%p544_p0)
}
 0x2ae   :  { %s548_s15 = scalar_lea.hbm %s727_s5, 256 }
 0x2af   :  { %p549_p1 = scmp.ne.s32.totalorder %s727_s5, %s548_s15  ;;  %p552_p2 = scmp.lt.u32.totalorder %s548_s15, %s727_s5 }
 0x2b1   :  { %p554_p3 = pnand %p552_p2, %p549_p1 }
 0x2b3   :  { %557 = shalt.err (!%p554_p3)
}
 0x2b4   :  { %s596_s20 = smov 128   ;;  %s597_s1 = smov 8  }
 0x2b5   :  { %334 = dma.vmem_to_hbm [thread:$0]  %s329_s4, 256, %s727_s5, [#allocation4], %s596_s20, %s596_s20, %s597_s1  }
 0x2b6   :  { %s598_s23 = smov [#allocation9]  }
 0x2b7   :  { %s340_s25 = sshll.u32 %s598_s23, 4  ;;  %s341_s25 = int_to_ptr.vmem [resolvable:$true] %s340_s25 }
 0x2b8   :  { %s558_s26 = scalar_lea.vmem %s341_s25, 256  ;;  %p563_p5 = scmp.lt.s32.totalorder %s341_s25, %s341_s25 }
 0x2b9   :  { %p559_p4 = scmp.ne.s32.totalorder %s341_s25, %s558_s26  ;;  %p564_p6 = scmp.lt.s32.totalorder %s558_s26, %s558_s26 }
 0x2bb   :  { %p565_p7 = por %p564_p6, %p563_p5 }
 0x2bd   :  { %p566_p8 = pnand %p565_p7, %p559_p4 }
 0x335   :  { %v312_v43 = vpop.xlane.xlu1 %311 }
 0x336   :  { %466 = vrcp.f32 %v312_v43 }
 0x339   :  { %v314_v44 = vpop.xlane.xlu1 %313 }
 0x33a   :  { %468 = vrcp.f32 %v314_v44 }
 0x340   :  { %v467_v45 = vpop.eup %466 }
 0x341   :  { %v317_v46 = vmul.f32 %v467_v45, %v463_v41 }
 0x343   :  { %321 = vst [vmem:[#allocation9] sm:$0xff] %v317_v46 }
 0x344   :  { %v469_v47 = vpop.eup %468 }
 0x345   :  { %v318_v48 = vmul.f32 %v469_v47, %v465_v42 }
 0x347   :  { %322 = vst [vmem:[#allocation9 + $0x8] sm:$0xff] %v318_v48 }
 0x348   :  { %569 = shalt.err (!%p566_p8)
}
 0x349   :  { %s570_s28 = scalar_lea.hbm %s728_s6, 256 }
 0x34a   :  { %p571_p9 = scmp.ne.s32.totalorder %s728_s6, %s570_s28  ;;  %p574_p10 = scmp.lt.u32.totalorder %s570_s28, %s728_s6 }
 0x34c   :  { %p576_p11 = pnand %p574_p10, %p571_p9 }
 0x34e   :  { %579 = shalt.err (!%p576_p11)
}
 0x34f   :  { %346 = dma.vmem_to_hbm [thread:$0]  %s341_s25, 256, %s728_s6, [#allocation10], %s596_s20, %s596_s20, %s597_s1  }
 0x350   :  { %584 = dma.done.wait [#allocation4], 256  }
 0x351   :  { %585 = vsyncadd [#allocation4], 4294967040 }
 0x352   :  { %586 = dma.done.wait [#allocation10], 256  }
 0x353   :  { %587 = vsyncadd [#allocation10], 4294967040 }
 0x354   :  { %353 = vsyncpa [#allocation3], 1 }
 0x355   :  { %354 = vsyncpa [#allocation6], 1 }
 0x356   :  { %355 = vsyncpa [#allocation4], 1 }
 0x357   :  { %356 = vsyncpa [#allocation10], 1 }

</bundles_post_ra>
